<compile_context>
chip_gen: v7x
topology: tpu7x:2x2x1
jax: 0.10.0
libtpu: 0.0.40
codegen_flags: <defaults>
</compile_context>

<pallas_src>
import jax
import jax.numpy as jnp
from jax import lax
from jax.experimental import pallas as pl
from jax.experimental.pallas import tpu as pltpu


def _linear_kernel(x_ref, w_ref, b_ref, o_ref):
    # x_ref: (TB, in_f)     current batch tile
    # w_ref: (out_f, in_f)  PyTorch-layout weight, VMEM-resident across grid
    # b_ref: (1, out_f)     bias row, VMEM-resident across grid
    # o_ref: (TB, out_f)    output tile in final (batch, out_f) layout
    acc = lax.dot_general(
        x_ref[...], w_ref[...],
        dimension_numbers=(((1,), (1,)), ((), ())),  # contract in_features
        preferred_element_type=jnp.float32,
    )                                                # -> (TB, out_f)
    o_ref[...] = (acc + b_ref[...]).astype(o_ref.dtype)


def _pick_tb(n):
    """Batch-tile size.

    * Small N: one full block (block dim == array dim, no /8 requirement).
    * Larger N: ~N/2 rounded up to a multiple of 8 so the grid has >=2 steps
      (lets the "parallel" axis shard across the 2 v7x TensorCores), capped at
      8192 rows.  VMEM at TB=8192 (lane-padded to 128 lanes, double-buffered):
      x ~8 MiB + out ~8 MiB, within the 32 MiB limit requested below.
    """
    if n <= 1024:
        return n
    half = -(-n // 2)                 # cdiv(n, 2)
    tb = ((half + 7) // 8) * 8        # round up to multiple of 8
    return min(tb, 8192)


def _linear_forward_pallas(x, weight, bias_row, *, tb):
    n, in_f = x.shape
    out_f = weight.shape[0]
    return pl.pallas_call(
        _linear_kernel,
        out_shape=jax.ShapeDtypeStruct((n, out_f), x.dtype),
        grid=(pl.cdiv(n, tb),),
        in_specs=[
            pl.BlockSpec((tb, in_f), lambda i: (i, 0)),     # batch-tiled x
            pl.BlockSpec((out_f, in_f), lambda i: (0, 0)),  # resident weight
            pl.BlockSpec((1, out_f), lambda i: (0, 0)),     # resident bias
        ],
        out_specs=pl.BlockSpec((tb, out_f), lambda i: (i, 0)),
        compiler_params=pltpu.CompilerParams(
            dimension_semantics=("parallel",),
            vmem_limit_bytes=32 * 1024 * 1024,
        ),
    )(x, weight, bias_row)


@jax.jit
def linear_forward(x, weight, bias):
    """x: (N, in_f); weight: (out_f, in_f) [PyTorch layout]; bias: (out_f,)."""
    out_f = weight.shape[0]
    tb = _pick_tb(x.shape[0])         # static under jit (depends on shape only)
    return _linear_forward_pallas(x, weight, bias.reshape(1, out_f), tb=tb)


if __name__ == "__main__":
    input_size = 5
    output_size = 2
    batch = 8

    key = jax.random.PRNGKey(0)
    k_x, k_w, k_b, k_x2, k_x3 = jax.random.split(key, 5)

    # Deterministic parameter init mimicking nn.Linear (uniform +-1/sqrt(in)).
    bound = 1.0 / (input_size ** 0.5)
    weight = jax.random.uniform(k_w, (output_size, input_size),
                                minval=-bound, maxval=bound,
                                dtype=jnp.float32)
    bias = jax.random.uniform(k_b, (output_size,),
                              minval=-bound, maxval=bound,
                              dtype=jnp.float32)

    # Small batch (matches the tutorial's per-device slice scale): single block.
    x = jax.random.normal(k_x, (batch, input_size), dtype=jnp.float32)
    out = jax.block_until_ready(linear_forward(x, weight, bias))
    ref = x @ weight.T + bias
    assert out.shape == (batch, output_size)
    assert jnp.allclose(out, ref, atol=1e-5, rtol=1e-5)

    # Mid batch: exercises the >=2-step grid path (tb = N/2).
    x_big = jax.random.normal(k_x2, (1152, input_size), dtype=jnp.float32)
    out_big = jax.block_until_ready(linear_forward(x_big, weight, bias))
    ref_big = x_big @ weight.T + bias
    assert out_big.shape == (1152, output_size)
    assert jnp.allclose(out_big, ref_big, atol=1e-5, rtol=1e-5)

    # Large batch: exercises the 8192-row tile cap + ragged last block.
    x_huge = jax.random.normal(k_x3, (20000, input_size), dtype=jnp.float32)
    out_huge = jax.block_until_ready(linear_forward(x_huge, weight, bias))
    ref_huge = x_huge @ weight.T + bias
    assert out_huge.shape == (20000, output_size)
    assert jnp.allclose(out_huge, ref_huge, atol=1e-5, rtol=1e-5)

    # TODO(synk): the module's in-forward print has no in-kernel equivalent;
    # it is reproduced here on the host side.
    print("\tIn Model: input size", x.shape, "output size", out.shape)
    print("KERNEL_OK")
</pallas_src>

<mosaic_0001>
module attributes {stable_mosaic.version = 11 : i64} {
  func.func @_linear_kernel(%arg0: i32, %arg1: memref<8x5xf32, #tpu.memory_space<vmem>>, %arg2: memref<2x5xf32, #tpu.memory_space<vmem>>, %arg3: memref<1x2xf32, #tpu.memory_space<vmem>>, %arg4: memref<8x2xf32, #tpu.memory_space<vmem>>) attributes {dimension_semantics = [#tpu.dimension_semantics<parallel>], iteration_bounds = array<i64: 1>, scalar_prefetch = 0 : i64, scratch_operands = 0 : i64, tpu.core_type = #tpu.core_type<tc>, window_params = [{transform_indices = @transform_0, window_bounds = array<i64: 8, 5>}, {pipeline_mode = #tpu.pipeline_mode<synchronous>, transform_indices = @transform_1, window_bounds = array<i64: 2, 5>}, {pipeline_mode = #tpu.pipeline_mode<synchronous>, transform_indices = @transform_2, window_bounds = array<i64: 1, 2>}, {transform_indices = @transform_3, window_bounds = array<i64: 8, 2>}]} {
    %c0 = arith.constant 0 : index
    %c0_0 = arith.constant 0 : index
    %0 = vector.load %arg1[%c0, %c0_0] : memref<8x5xf32, #tpu.memory_space<vmem>>, vector<8x5xf32>
    %c0_1 = arith.constant 0 : index
    %c0_2 = arith.constant 0 : index
    %1 = vector.load %arg2[%c0_1, %c0_2] : memref<2x5xf32, #tpu.memory_space<vmem>>, vector<2x5xf32>
    %cst = arith.constant dense<0.000000e+00> : vector<8x2xf32>
    %2 = tpu.matmul %0, %1, %cst {dimension_numbers = #tpu.dot_dimension_numbers<[1], [1], [0], [0], [0, 0, 1, 0], [], []>} : vector<8x5xf32>, vector<2x5xf32>, vector<8x2xf32> -> vector<8x2xf32>
    %c0_3 = arith.constant 0 : index
    %c0_4 = arith.constant 0 : index
    %3 = vector.load %arg3[%c0_3, %c0_4] : memref<1x2xf32, #tpu.memory_space<vmem>>, vector<1x2xf32>
    %4 = vector.broadcast %3 : vector<1x2xf32> to vector<8x2xf32>
    %5 = arith.addf %2, %4 : vector<8x2xf32>
    %c0_5 = arith.constant 0 : index
    %c0_6 = arith.constant 0 : index
    %6 = vector.load %arg4[%c0_5, %c0_6] : memref<8x2xf32, #tpu.memory_space<vmem>>, vector<8x2xf32>
    tpu.vector_store %arg4[%c0_5, %c0_6], %5 {strides = array<i32>} : memref<8x2xf32, #tpu.memory_space<vmem>>, vector<8x2xf32>,
    return
  }
  func.func @transform_0(%arg0: i32) -> (i32, i32) {
    %c0_i32 = arith.constant 0 : i32
    %c0_i32_0 = arith.constant 0 : i32
    return %arg0, %c0_i32 : i32, i32
  }
  func.func @transform_1(%arg0: i32) -> (i32, i32) {
    %c0_i32 = arith.constant 0 : i32
    %c0_i32_0 = arith.constant 0 : i32
    %c0_i32_1 = arith.constant 0 : i32
    return %c0_i32, %c0_i32_0 : i32, i32
  }
  func.func @transform_2(%arg0: i32) -> (i32, i32) {
    %c0_i32 = arith.constant 0 : i32
    %c0_i32_0 = arith.constant 0 : i32
    %c0_i32_1 = arith.constant 0 : i32
    return %c0_i32, %c0_i32_0 : i32, i32
  }
  func.func @transform_3(%arg0: i32) -> (i32, i32) {
    %c0_i32 = arith.constant 0 : i32
    %c0_i32_0 = arith.constant 0 : i32
    return %arg0, %c0_i32 : i32, i32
  }
}

</mosaic_0001>

<bundles_post_ra>
// kernel: linear_forward.1
= control target key start
LH: loop header
LB: loop body
LE: loop exit
PB: predicated region body
PF: predicated region fallthrough
CT: control target
= control target key end

     0   :  { %8 = vsyncpa [#allocation3], 0  ;;  %s156_s12 = smov [#allocation2]   ;;  %s200_s0 = inlined_call_operand.hbm [shape: f32[8,5], index: 0, kind: input, shape index: {}]   ;;  %s201_s1 = inlined_call_operand.vmem [shape: f32[2,5], index: 1, kind: input, shape index: {}]   ;;  %s202_s2 = inlined_call_operand.vmem [shape: f32[1,2], index: 2, kind: input, shape index: {}]   ;;  %s203_s3 = inlined_call_operand.vmem [shape: f32[8,2], index: 3, kind: output, shape index: {}]  }
   0x1   :  { %s15_s13 = sshll.u32 %s156_s12, 4  ;;  %s132_s16 = scalar_lea.hbm %s200_s0, 128  ;;  %s16_s13 = int_to_ptr.vmem [resolvable:$true] %s15_s13 }
   0x2   :  { %p133_p0 = scmp.ne.s32.totalorder %s200_s0, %s132_s16  ;;  %p136_p1 = scmp.lt.u32.totalorder %s132_s16, %s200_s0 }
   0x4   :  { %p138_p2 = pnand %p136_p1, %p133_p0 }
   0x6   :  { %141 = shalt.err (!%p138_p2)
}
   0x7   :  { %s142_s21 = scalar_lea.vmem %s16_s13, 128  ;;  %p147_p4 = scmp.lt.s32.totalorder %s16_s13, %s16_s13 }
   0x8   :  { %p143_p3 = scmp.ne.s32.totalorder %s16_s13, %s142_s21  ;;  %p148_p5 = scmp.lt.s32.totalorder %s142_s21, %s142_s21 }
   0xa   :  { %p149_p6 = por %p148_p5, %p147_p4 }
   0xc   :  { %p150_p7 = pnand %p149_p6, %p143_p3 }
   0xe   :  { %153 = shalt.err (!%p150_p7)
}
   0xf   :  { %18 = dma.hbm_to_vmem [thread:$0]  %s200_s0, 128, %s16_s13, [#allocation3]  }
  0x10   :  { %154 = dma.done.wait [#allocation3], 128  }
  0x11   :  { %155 = vsyncadd [#allocation3], 4294967168  ;;  %v157_v0 = vmov 0.0   ;;  %vm158_vm0 = vmmov 0   ;;  %vm35_vm1 = vcmask 39936   ;;  %v26_v2 = vld [vmem:[#allocation2] sm:$0xff] }
  0x12   :  { %124 = vmatprep.subr.mxu0 %v157_v0  ;;  %126 = vmatprep.mubr.msk.f32.mxu0 %vm158_vm0, %v157_v0  ;;  %v27_v1 = vld [vmem:[%s201_s1] sm:$0x3]  ;;  %vm112_vm2 = vcmask 15360  }
  0x13   :  { %125 = vmatpush3.xpose.msk.msra.mxu0 %vm35_vm1, %v27_v1  ;;  %v119_v3 = vld [vmem:[%s202_s2] ss:$0 sm:$0xff] }
  0x16   :  { %127 = vmatmul.mubr.msk.f32.vlgmr.msra.gmra.mrb[0].mxu0 %vm35_vm1, %v26_v2 }
  0xe9   :  { %v108_v4 = vpop.f32.mrb[0].mxu0 }
  0xea   :  { %v109_v5 = vadd.f32 %v119_v3, %v108_v4  ;;  %v128_v6 = vpop.f32.mrb[1].mxu0 }
  0xec   :  { %113 = vst.msk [vmem:[%s203_s3] sm:$0xff] %vm112_vm2, %v109_v5 }
  0xed   :  { %118 = vsyncpa [#allocation3], 1 }

</bundles_post_ra>
